<compile_context>
chip_gen: v6e
topology: v6e:2x2x1
jax: 0.10.0
libtpu: 0.0.40
codegen_flags: <defaults>
</compile_context>

<pallas_src>
import functools

import jax
import jax.numpy as jnp
from jax.experimental import pallas as pl
from jax.experimental.pallas import tpu as pltpu


def _round_up(x, m):
    return (x + m - 1) // m * m


def _pick_cout_tile(cout):
    # v6e/v7x MXUs are 2x256^2 -> 256-wide output tiles fill the systolic
    # width; v5e's 4x128^2 is already matched by 128.  Shape-driven so tiny
    # Cout (tests) keeps channel padding low.
    return 256 if cout >= 256 else 128


def _pick_row_tile(h, w, m_target=512):
    # Smallest divisor of H whose M = th*W fills the MXU sublanes (>= ~512),
    # keeping the f32 accumulator / im2col temporaries bounded while leaving
    # several row tiles for the input/output pipeline.
    # TODO(synk): support non-divisible H via a cdiv grid + masked stats tile.
    for th in range(1, h + 1):
        if h % th == 0 and th * w >= m_target:
            return th
    return h


def _pick_bn_row_tile(h, w, tc, max_bytes=6 * 1024 * 1024):
    # Largest divisor of H whose (th2, W, tc) f32 block stays under ~6 MiB:
    # BN+ReLU is purely HBM-bound, so bigger blocks get closer to roofline.
    best = 1
    for th in range(1, h + 1):
        if h % th == 0 and th * w * tc * 4 <= max_bytes:
            best = th
    return best


def _vmem_limit_bytes():
    # Re-derive per generation: ~8 MiB headroom for Mosaic internal scratch on
    # v7x (64 MiB/TC); allow up to 96 MiB on v5e/v6e (128 MiB physical).
    cap = 64 * 1024 * 1024
    try:
        cap = int(pltpu.get_tpu_info().vmem_capacity_bytes)
    except Exception:
        pass
    return max(min(cap - 8 * 1024 * 1024, 96 * 1024 * 1024), 32 * 1024 * 1024)


# ----------------------------- Pallas kernels -----------------------------


def conv_stats_kernel(x_ref, w_ref, o_ref, sum_ref, sq_ref, *,
                      th, W, rate, KH, KW, Cin, fold_taps):
    """Dilated-conv row/Cout tile with fused per-batch, per-channel
    sum / sum-of-squares partials.

    Grid = (N, cout_tiles, row_tiles).  The stats outputs map to block
    (n, jc), so they stay resident in VMEM across the inner 'arbitrary'
    row-tile axis and accumulate without extra HBM traffic; the full per-batch
    input slab depends only on n (outermost) so it is DMA'd once per image.
    """
    i = pl.program_id(2)

    @pl.when(i == 0)
    def _():
        sum_ref[...] = jnp.zeros_like(sum_ref)
        sq_ref[...] = jnp.zeros_like(sq_ref)

    r0 = i * th
    if th % 8 == 0:
        r0 = pl.multiple_of(r0, 8)

    if fold_taps:
        # Small Cin: fold the KH*KW dilated taps im2col-style into the
        # contraction dim -> one (th*W, KH*KW*Cin) x (KH*KW*Cin, tc) matmul
        # (better MXU occupancy than KH*KW tiny K=Cin matmuls).
        pieces = []
        for kh in range(KH):
            for kw in range(KW):
                pieces.append(
                    x_ref[0, pl.ds(r0 + kh * rate, th),
                          kw * rate:kw * rate + W, :])
        xcat = pieces[0] if len(pieces) == 1 else jnp.concatenate(
            pieces, axis=-1)
        lhs = xcat.reshape(th * W, KH * KW * Cin)
        acc = jnp.dot(lhs, w_ref[...], preferred_element_type=jnp.float32)
    else:
        # Large Cin (>= 128): per-tap accumulating matmuls.  Each tap already
        # has K >= 128, and this avoids materializing the (th, W, KH*KW*Cin)
        # concat copy (9x the input slab) plus its relayout every grid step;
        # each misaligned sublane slab is read exactly once.
        acc = jnp.zeros((th * W, o_ref.shape[-1]), jnp.float32)
        t = 0
        for kh in range(KH):
            for kw in range(KW):
                tap = x_ref[0, pl.ds(r0 + kh * rate, th),
                            kw * rate:kw * rate + W, :].reshape(th * W, Cin)
                acc = acc + jnp.dot(tap, w_ref[t * Cin:(t + 1) * Cin, :],
                                    preferred_element_type=jnp.float32)
                t += 1

    o_ref[...] = acc.reshape(o_ref.shape)

    # Fused BN batch statistics (per-batch partials; no conv_out re-read).
    sum_ref[...] += jnp.sum(acc, axis=0, keepdims=True).reshape(sum_ref.shape)
    sq_ref[...] += jnp.sum(acc * acc, axis=0,
                           keepdims=True).reshape(sq_ref.shape)


def bn_relu_kernel(y_ref, scale_ref, shift_ref, o_ref):
    # y: (1, th2, W, tc) f32; scale/shift: (1, tc) broadcast over rows/cols.
    o_ref[...] = jnp.maximum(y_ref[...] * scale_ref[...] + shift_ref[...], 0.0)


# ------------------------------ JAX wrapper --------------------------------


def aspp_forward(x_nchw, weight_oihw, gamma, beta, *, rate, eps=1e-5):
    """ASPP_module.forward: ReLU(BN(atrous_conv(x))).  x is NCHW (PyTorch)."""
    N, Cin, H, W = x_nchw.shape
    Cout = weight_oihw.shape[0]
    if rate == 1:
        KH = KW = 1
        pad = 0
    else:
        KH = KW = 3
        pad = rate

    tc = _pick_cout_tile(Cout)
    C_pad = _round_up(Cout, tc)
    n_cout = C_pad // tc
    th = _pick_row_tile(H, W)
    n_rows = H // th
    th2 = _pick_bn_row_tile(H, W, tc)
    n_rows2 = H // th2
    K = KH * KW * Cin
    fold_taps = (KH * KW == 1) or (Cin < 128)
    vmem_limit = _vmem_limit_bytes()

    # Layout prep (fuses into one XLA pass under jit): NCHW -> NHWC, bf16 cast
    # for the MXU, halo padding.
    x = jnp.transpose(x_nchw, (0, 2, 3, 1)).astype(jnp.bfloat16)
    x_pad = jnp.pad(x, ((0, 0), (pad, pad), (pad, pad), (0, 0)))
    Hp, Wp = H + 2 * pad, W + 2 * pad

    # OIHW -> (KH*KW*Cin, C_pad) bf16, matching the in-kernel tap ordering
    # (row index = (kh*KW + kw)*Cin + cin).  Padded output channels get zero
    # weights -> zero conv output -> zero after BN (gamma/beta padded with 0).
    w = jnp.transpose(weight_oihw.astype(jnp.bfloat16), (2, 3, 1, 0))
    w = w.reshape(K, Cout)
    w = jnp.pad(w, ((0, 0), (0, C_pad - Cout)))

    # ---- Kernel 1: dilated conv + fused per-batch statistics ----
    conv_out, sums, sqs = pl.pallas_call(
        functools.partial(conv_stats_kernel, th=th, W=W, rate=rate,
                          KH=KH, KW=KW, Cin=Cin, fold_taps=fold_taps),
        out_shape=(
            jax.ShapeDtypeStruct((N, H, W, C_pad), jnp.float32),
            jax.ShapeDtypeStruct((N, 1, C_pad), jnp.float32),
            jax.ShapeDtypeStruct((N, 1, C_pad), jnp.float32),
        ),
        grid_spec=pltpu.PrefetchScalarGridSpec(
            num_scalar_prefetch=0,
            grid=(N, n_cout, n_rows),
            in_specs=[
                # Full padded image of one batch element; depends only on the
                # OUTERMOST axis n -> DMA'd once per image, resident across
                # all Cout tiles and row tiles.
                pl.BlockSpec((1, Hp, Wp, Cin), lambda n, jc, i: (n, 0, 0, 0)),
                pl.BlockSpec((K, tc), lambda n, jc, i: (0, jc)),
            ],
            out_specs=(
                pl.BlockSpec((1, th, W, tc), lambda n, jc, i: (n, i, 0, jc)),
                pl.BlockSpec((1, 1, tc), lambda n, jc, i: (n, 0, jc)),
                pl.BlockSpec((1, 1, tc), lambda n, jc, i: (n, 0, jc)),
            ),
        ),
        compiler_params=pltpu.CompilerParams(
            dimension_semantics=("parallel", "parallel", "arbitrary"),
            vmem_limit_bytes=vmem_limit),
    )(x_pad, w)

    # ---- BN affine from batch statistics (tiny per-channel math in XLA) ----
    cnt = float(N * H * W)
    mean = jnp.sum(sums, axis=0) / cnt                       # (1, C_pad)
    # Single-pass variance; clamp >= 0 to guard against f32 cancellation.
    var = jnp.maximum(jnp.sum(sqs, axis=0) / cnt - mean * mean, 0.0)
    gamma_p = jnp.pad(gamma.astype(jnp.float32), (0, C_pad - Cout))[None, :]
    beta_p = jnp.pad(beta.astype(jnp.float32), (0, C_pad - Cout))[None, :]
    scale = gamma_p / jnp.sqrt(var + eps)
    shift = beta_p - mean * scale

    # ---- Kernel 2: normalize + ReLU, written in place over conv_out ----
    out_nhwc = pl.pallas_call(
        bn_relu_kernel,
        out_shape=jax.ShapeDtypeStruct((N, H, W, C_pad), jnp.float32),
        grid_spec=pltpu.PrefetchScalarGridSpec(
            num_scalar_prefetch=0,
            grid=(N, n_rows2, n_cout),
            in_specs=[
                pl.BlockSpec((1, th2, W, tc), lambda n, i, jc: (n, i, 0, jc)),
                pl.BlockSpec((1, tc), lambda n, i, jc: (0, jc)),
                pl.BlockSpec((1, tc), lambda n, i, jc: (0, jc)),
            ],
            out_specs=pl.BlockSpec((1, th2, W, tc),
                                   lambda n, i, jc: (n, i, 0, jc)),
        ),
        input_output_aliases={0: 0},           # overwrite conv_out in place
        compiler_params=pltpu.CompilerParams(
            dimension_semantics=("parallel", "parallel", "parallel"),
            vmem_limit_bytes=vmem_limit),
    )(conv_out, scale, shift)

    # Drop channel padding (free if Cout == C_pad) and return NCHW to match
    # the PyTorch module.
    if C_pad != Cout:
        out_nhwc = out_nhwc[..., :Cout]
    return jnp.transpose(out_nhwc, (0, 3, 1, 2))


# ------------------------------ Reference ----------------------------------


def aspp_reference(x_nchw, weight_oihw, gamma, beta, rate, eps=1e-5):
    """Pure-JAX reference with the same bf16-input / f32-accumulate conv."""
    pad = 0 if rate == 1 else rate
    y = jax.lax.conv_general_dilated(
        x_nchw.astype(jnp.bfloat16), weight_oihw.astype(jnp.bfloat16),
        window_strides=(1, 1), padding=[(pad, pad), (pad, pad)],
        rhs_dilation=(rate, rate),
        dimension_numbers=("NCHW", "OIHW", "NCHW"),
        preferred_element_type=jnp.float32)
    mean = jnp.mean(y, axis=(0, 2, 3), keepdims=True)
    var = jnp.mean((y - mean) ** 2, axis=(0, 2, 3), keepdims=True)
    yn = (y - mean) / jnp.sqrt(var + eps)
    yn = yn * gamma[None, :, None, None] + beta[None, :, None, None]
    return jnp.maximum(yn, 0.0)


# -------------------------------- Main --------------------------------------


if __name__ == "__main__":
    key = jax.random.PRNGKey(0)
    N, Cin, Cout, H, W = 2, 4, 8, 16, 16

    k_x, k_w1, k_w2 = jax.random.split(key, 3)
    x = jax.random.normal(k_x, (N, Cin, H, W), dtype=jnp.float32)

    # Deterministic BN affine params (slightly nontrivial).
    gamma = 1.0 + 0.1 * jnp.arange(Cout, dtype=jnp.float32)
    beta = 0.05 * jnp.arange(Cout, dtype=jnp.float32)

    for rate, k_w in ((1, k_w1), (2, k_w2)):
        ksz = 1 if rate == 1 else 3
        weight = 0.1 * jax.random.normal(
            k_w, (Cout, Cin, ksz, ksz), dtype=jnp.float32)

        fwd = jax.jit(functools.partial(aspp_forward, rate=rate))
        out = jax.block_until_ready(fwd(x, weight, gamma, beta))
        ref = jax.block_until_ready(aspp_reference(x, weight, gamma, beta, rate))

        assert out.shape == (N, Cout, H, W), out.shape
        err = float(jnp.max(jnp.abs(out - ref)))
        assert jnp.allclose(out, ref, atol=2e-3, rtol=2e-3), (
            f"mismatch at rate={rate}: max err {err}")

    print("KERNEL_OK")
</pallas_src>

<mosaic_0001>
module attributes {stable_mosaic.version = 11 : i64} {
  func.func @bn_relu_kernel(%arg0: i32, %arg1: i32, %arg2: i32, %arg3: memref<1x16x16x128xf32, #tpu.memory_space<vmem>>, %arg4: memref<1x128xf32, #tpu.memory_space<vmem>>, %arg5: memref<1x128xf32, #tpu.memory_space<vmem>>, %arg6: memref<1x16x16x128xf32, #tpu.memory_space<vmem>>) attributes {dimension_semantics = [#tpu.dimension_semantics<parallel>, #tpu.dimension_semantics<parallel>, #tpu.dimension_semantics<parallel>], iteration_bounds = array<i64: 2, 1, 1>, scalar_prefetch = 0 : i64, scratch_operands = 0 : i64, tpu.core_type = #tpu.core_type<tc>, window_params = [{transform_indices = @transform_0, window_bounds = array<i64: 1, 16, 16, 128>}, {transform_indices = @transform_1, window_bounds = array<i64: 1, 128>}, {transform_indices = @transform_2, window_bounds = array<i64: 1, 128>}, {transform_indices = @transform_3, window_bounds = array<i64: 1, 16, 16, 128>}]} {
    %c0 = arith.constant 0 : index
    %c0_0 = arith.constant 0 : index
    %c0_1 = arith.constant 0 : index
    %c0_2 = arith.constant 0 : index
    %0 = vector.load %arg3[%c0, %c0_0, %c0_1, %c0_2] : memref<1x16x16x128xf32, #tpu.memory_space<vmem>>, vector<1x16x16x128xf32>
    %c0_3 = arith.constant 0 : index
    %c0_4 = arith.constant 0 : index
    %1 = vector.load %arg4[%c0_3, %c0_4] : memref<1x128xf32, #tpu.memory_space<vmem>>, vector<1x128xf32>
    %2 = vector.shape_cast %1 : vector<1x128xf32> to vector<1x1x1x128xf32>
    %3 = vector.broadcast %2 : vector<1x1x1x128xf32> to vector<1x16x16x128xf32>
    %4 = arith.mulf %0, %3 : vector<1x16x16x128xf32>
    %c0_5 = arith.constant 0 : index
    %c0_6 = arith.constant 0 : index
    %5 = vector.load %arg5[%c0_5, %c0_6] : memref<1x128xf32, #tpu.memory_space<vmem>>, vector<1x128xf32>
    %6 = vector.shape_cast %5 : vector<1x128xf32> to vector<1x1x1x128xf32>
    %7 = vector.broadcast %6 : vector<1x1x1x128xf32> to vector<1x16x16x128xf32>
    %8 = arith.addf %4, %7 : vector<1x16x16x128xf32>
    %cst = arith.constant 0.000000e+00 : f32
    %9 = vector.broadcast %cst : f32 to vector<1x16x16x128xf32>
    %10 = arith.maximumf %8, %9 : vector<1x16x16x128xf32>
    %c0_7 = arith.constant 0 : index
    %c0_8 = arith.constant 0 : index
    %c0_9 = arith.constant 0 : index
    %c0_10 = arith.constant 0 : index
    %11 = vector.load %arg6[%c0_7, %c0_8, %c0_9, %c0_10] : memref<1x16x16x128xf32, #tpu.memory_space<vmem>>, vector<1x16x16x128xf32>
    tpu.vector_store %arg6[%c0_7, %c0_8, %c0_9, %c0_10], %10 {strides = array<i32>} : memref<1x16x16x128xf32, #tpu.memory_space<vmem>>, vector<1x16x16x128xf32>,
    return
  }
  func.func @transform_0(%arg0: i32, %arg1: i32, %arg2: i32) -> (i32, i32, i32, i32) {
    %c0_i32 = arith.constant 0 : i32
    %c0_i32_0 = arith.constant 0 : i32
    return %arg0, %arg1, %c0_i32, %arg2 : i32, i32, i32, i32
  }
  func.func @transform_1(%arg0: i32, %arg1: i32, %arg2: i32) -> (i32, i32) {
    %c0_i32 = arith.constant 0 : i32
    %c0_i32_0 = arith.constant 0 : i32
    return %c0_i32, %arg2 : i32, i32
  }
  func.func @transform_2(%arg0: i32, %arg1: i32, %arg2: i32) -> (i32, i32) {
    %c0_i32 = arith.constant 0 : i32
    %c0_i32_0 = arith.constant 0 : i32
    return %c0_i32, %arg2 : i32, i32
  }
  func.func @transform_3(%arg0: i32, %arg1: i32, %arg2: i32) -> (i32, i32, i32, i32) {
    %c0_i32 = arith.constant 0 : i32
    %c0_i32_0 = arith.constant 0 : i32
    return %arg0, %arg1, %c0_i32, %arg2 : i32, i32, i32, i32
  }
}

module attributes {stable_mosaic.version = 11 : i64} {
  func.func @conv_stats_kernel(%arg0: i32, %arg1: i32, %arg2: i32, %arg3: memref<1x16x16x4xbf16, #tpu.memory_space<vmem>>, %arg4: memref<4x128xbf16, #tpu.memory_space<vmem>>, %arg5: memref<1x16x16x128xf32, #tpu.memory_space<vmem>>, %arg6: memref<1x1x128xf32, #tpu.memory_space<vmem>>, %arg7: memref<1x1x128xf32, #tpu.memory_space<vmem>>) attributes {dimension_semantics = [#tpu.dimension_semantics<parallel>, #tpu.dimension_semantics<parallel>, #tpu.dimension_semantics<arbitrary>], iteration_bounds = array<i64: 2, 1, 1>, scalar_prefetch = 0 : i64, scratch_operands = 0 : i64, tpu.core_type = #tpu.core_type<tc>, window_params = [{transform_indices = @transform_0, window_bounds = array<i64: 1, 16, 16, 4>}, {transform_indices = @transform_1, window_bounds = array<i64: 4, 128>}, {transform_indices = @transform_2, window_bounds = array<i64: 1, 16, 16, 128>}, {transform_indices = @transform_3, window_bounds = array<i64: 1, 1, 128>}, {transform_indices = @transform_4, window_bounds = array<i64: 1, 1, 128>}]} {
    %c0_i32 = arith.constant 0 : i32
    %0 = arith.cmpi eq, %arg2, %c0_i32 : i32
    %1 = arith.extui %0 : i1 to i32
    %c0_i32_0 = arith.constant 0 : i32
    %2 = arith.cmpi ne, %1, %c0_i32_0 : i32
    scf.if %2 {
      %cst_24 = arith.constant 0.000000e+00 : f32
      %27 = vector.broadcast %cst_24 : f32 to vector<1x1x128xf32>
      %c0_25 = arith.constant 0 : index
      %c0_26 = arith.constant 0 : index
      %c0_27 = arith.constant 0 : index
      %28 = vector.load %arg6[%c0_25, %c0_26, %c0_27] : memref<1x1x128xf32, #tpu.memory_space<vmem>>, vector<1x1x128xf32>
      tpu.vector_store %arg6[%c0_25, %c0_26, %c0_27], %27 {strides = array<i32>} : memref<1x1x128xf32, #tpu.memory_space<vmem>>, vector<1x1x128xf32>,
      %cst_28 = arith.constant 0.000000e+00 : f32
      %29 = vector.broadcast %cst_28 : f32 to vector<1x1x128xf32>
      %c0_29 = arith.constant 0 : index
      %c0_30 = arith.constant 0 : index
      %c0_31 = arith.constant 0 : index
      %30 = vector.load %arg7[%c0_29, %c0_30, %c0_31] : memref<1x1x128xf32, #tpu.memory_space<vmem>>, vector<1x1x128xf32>
      tpu.vector_store %arg7[%c0_29, %c0_30, %c0_31], %29 {strides = array<i32>} : memref<1x1x128xf32, #tpu.memory_space<vmem>>, vector<1x1x128xf32>,
    } else {
    }
    %c16_i32 = arith.constant 16 : i32
    %3 = arith.muli %arg2, %c16_i32 : i32
    %4 = tpu.assume_multiple %3, 8 : i32
    %c0_i32_1 = arith.constant 0 : i32
    %5 = arith.addi %4, %c0_i32_1 : i32
    %c0 = arith.constant 0 : index
    %6 = arith.index_cast %5 : i32 to index
    %c0_2 = arith.constant 0 : index
    %c0_3 = arith.constant 0 : index
    %7 = vector.load %arg3[%c0, %6, %c0_2, %c0_3] : memref<1x16x16x4xbf16, #tpu.memory_space<vmem>>, vector<1x16x16x4xbf16>
    %8 = vector.shape_cast %7 : vector<1x16x16x4xbf16> to vector<16x16x4xbf16>
    %9 = vector.shape_cast %8 : vector<16x16x4xbf16> to vector<256x4xbf16>
    %c0_4 = arith.constant 0 : index
    %c0_5 = arith.constant 0 : index
    %10 = vector.load %arg4[%c0_4, %c0_5] : memref<4x128xbf16, #tpu.memory_space<vmem>>, vector<4x128xbf16>
    %cst = arith.constant dense<0.000000e+00> : vector<256x128xf32>
    %11 = tpu.matmul %9, %10, %cst {dimension_numbers = #tpu.dot_dimension_numbers<[1], [0], [0], [1], [0, 0, 1, 1], [], []>} : vector<256x4xbf16>, vector<4x128xbf16>, vector<256x128xf32> -> vector<256x128xf32>
    %12 = vector.shape_cast %11 : vector<256x128xf32> to vector<1x16x16x128xf32>
    %c0_6 = arith.constant 0 : index
    %c0_7 = arith.constant 0 : index
    %c0_8 = arith.constant 0 : index
    %c0_9 = arith.constant 0 : index
    %13 = vector.load %arg5[%c0_6, %c0_7, %c0_8, %c0_9] : memref<1x16x16x128xf32, #tpu.memory_space<vmem>>, vector<1x16x16x128xf32>
    tpu.vector_store %arg5[%c0_6, %c0_7, %c0_8, %c0_9], %12 {strides = array<i32>} : memref<1x16x16x128xf32, #tpu.memory_space<vmem>>, vector<1x16x16x128xf32>,
    %c0_10 = arith.constant 0 : index
    %c0_11 = arith.constant 0 : index
    %c0_12 = arith.constant 0 : index
    %14 = vector.load %arg6[%c0_10, %c0_11, %c0_12] : memref<1x1x128xf32, #tpu.memory_space<vmem>>, vector<1x1x128xf32>
    %cst_13 = arith.constant dense<0.000000e+00> : vector<128xf32>
    %15 = vector.multi_reduction <add>, %11, %cst_13 [0] : vector<256x128xf32> to vector<128xf32>
    %16 = vector.shape_cast %15 : vector<128xf32> to vector<1x128xf32>
    %17 = vector.shape_cast %16 : vector<1x128xf32> to vector<1x1x128xf32>
    %18 = arith.addf %14, %17 : vector<1x1x128xf32>
    %c0_14 = arith.constant 0 : index
    %c0_15 = arith.constant 0 : index
    %c0_16 = arith.constant 0 : index
    %19 = vector.load %arg6[%c0_14, %c0_15, %c0_16] : memref<1x1x128xf32, #tpu.memory_space<vmem>>, vector<1x1x128xf32>
    tpu.vector_store %arg6[%c0_14, %c0_15, %c0_16], %18 {strides = array<i32>} : memref<1x1x128xf32, #tpu.memory_space<vmem>>, vector<1x1x128xf32>,
    %c0_17 = arith.constant 0 : index
    %c0_18 = arith.constant 0 : index
    %c0_19 = arith.constant 0 : index
    %20 = vector.load %arg7[%c0_17, %c0_18, %c0_19] : memref<1x1x128xf32, #tpu.memory_space<vmem>>, vector<1x1x128xf32>
    %21 = arith.mulf %11, %11 : vector<256x128xf32>
    %cst_20 = arith.constant dense<0.000000e+00> : vector<128xf32>
    %22 = vector.multi_reduction <add>, %21, %cst_20 [0] : vector<256x128xf32> to vector<128xf32>
    %23 = vector.shape_cast %22 : vector<128xf32> to vector<1x128xf32>
    %24 = vector.shape_cast %23 : vector<1x128xf32> to vector<1x1x128xf32>
    %25 = arith.addf %20, %24 : vector<1x1x128xf32>
    %c0_21 = arith.constant 0 : index
    %c0_22 = arith.constant 0 : index
    %c0_23 = arith.constant 0 : index
    %26 = vector.load %arg7[%c0_21, %c0_22, %c0_23] : memref<1x1x128xf32, #tpu.memory_space<vmem>>, vector<1x1x128xf32>
    tpu.vector_store %arg7[%c0_21, %c0_22, %c0_23], %25 {strides = array<i32>} : memref<1x1x128xf32, #tpu.memory_space<vmem>>, vector<1x1x128xf32>,
    return
  }
  func.func @transform_0(%arg0: i32, %arg1: i32, %arg2: i32) -> (i32, i32, i32, i32) {
    %c0_i32 = arith.constant 0 : i32
    %c0_i32_0 = arith.constant 0 : i32
    %c0_i32_1 = arith.constant 0 : i32
    %c0_i32_2 = arith.constant 0 : i32
    return %arg0, %c0_i32, %c0_i32_0, %c0_i32_1 : i32, i32, i32, i32
  }
  func.func @transform_1(%arg0: i32, %arg1: i32, %arg2: i32) -> (i32, i32) {
    %c0_i32 = arith.constant 0 : i32
    %c0_i32_0 = arith.constant 0 : i32
    return %c0_i32, %arg1 : i32, i32
  }
  func.func @transform_2(%arg0: i32, %arg1: i32, %arg2: i32) -> (i32, i32, i32, i32) {
    %c0_i32 = arith.constant 0 : i32
    %c0_i32_0 = arith.constant 0 : i32
    return %arg0, %arg2, %c0_i32, %arg1 : i32, i32, i32, i32
  }
  func.func @transform_3(%arg0: i32, %arg1: i32, %arg2: i32) -> (i32, i32, i32) {
    %c0_i32 = arith.constant 0 : i32
    %c0_i32_0 = arith.constant 0 : i32
    return %arg0, %c0_i32, %arg1 : i32, i32, i32
  }
  func.func @transform_4(%arg0: i32, %arg1: i32, %arg2: i32) -> (i32, i32, i32) {
    %c0_i32 = arith.constant 0 : i32
    %c0_i32_0 = arith.constant 0 : i32
    return %arg0, %c0_i32, %arg1 : i32, i32, i32
  }
}

</mosaic_0001>

<bundles_post_ra>
// kernel: aspp_forward.2
= control target key start
LH: loop header
LB: loop body
LE: loop exit
PB: predicated region body
PF: predicated region fallthrough
CT: control target
= control target key end

     0   :  { %s1149_s15 = smov 0   ;;  %s1151_s16 = smov 0   ;;  %s1329_s0 = inlined_call_operand.vmem [shape: bf16[2,16,16,4], index: 0, kind: input, shape index: {}]   ;;  %s1330_s1 = inlined_call_operand.vmem [shape: bf16[4,128], index: 1, kind: input, shape index: {}]   ;;  %s1331_s2 = inlined_call_operand.vmem [shape: f32[2,16,16,128], index: 2, kind: output, shape index: {0}]   ;;  %s1332_s3 = inlined_call_operand.vmem [shape: f32[2,1,128], index: 3, kind: output, shape index: {1}]   ;;  %s1333_s4 = inlined_call_operand.vmem [shape: f32[2,1,128], index: 4, kind: output, shape index: {2}]  }
   0x1   :  { %s1153_s17 = smov 0  }
   0x2 LB: > { %s34_s18 = sadd.s32 1, %s1117_s16  ;;  %p962_p0 = scmp.ge.s32.totalorder %s1121_s17, 1  ;;  %s1121_s17 = sphi %s1153_s17, %s15_s17   ;;  %s1117_s16 = sphi %s1151_s16, %s1335_s16   ;;  %s1113_s15 = sphi %s1149_s15, %s1334_s15  }
   0x3   : > { %p36_p1 = scmp.ge.s32.totalorder %s34_s18, 2  ;;  %p203_p2 = scmp.lt.s32.totalorder %s1121_s17, 3 }
   0x5   : > { %s1337_s18 = smov (%p36_p1, %s34_s18), 0  ;;  %p204_p3 = pnand %p962_p0, %p203_p2 }
   0x6   : > { %p253_p4 = scmp.lt.s32.totalorder (!%p204_p3), %s1113_s15, 1 }
   0x7   : > { %207 = sbr.rel (%p204_p3) target bundleno = 295 (0x127), region = 28 }
   0xc   : > { %v331_v0 = vld [vmem:[%s1330_s1] sm:$0x3]  ;;  %vm461_vm0 = vcmask 1041408   ;;  %s1339_s15 = smov (!%p253_p4, %s1113_s15), 1  ;;  %vm412_vm1 = vcmask 31744   ;;  %v1123_v18 = vmov 0.0  }
   0xd   : > { %1056 = vmatprep.subr.msk.bf16.mxu0 %vm461_vm0, %v331_v0  ;;  %v463_v1 = vsel %vm461_vm0, %v331_v0, 0  ;;  %1057 = vmatprep.subr.msk.bf16.mxu1 %vm461_vm0, %v331_v0  ;;  %s1001_s21 = sshll.u32 %s1339_s15, 7  ;;  %s1214_s27 = scalar_lea.vmem %s1332_s3, %s1339_s15 }
   0xe   : > { %1021 = vmatpush3.bf16.msra.mxu0 %v463_v1  ;;  %1055 = vmatpush3.bf16.msra.mxu1 %v463_v1  ;;  %s1176_s24 = scalar_lea.vmem %s1329_s0, %s1001_s21  ;;  %s1220_s30 = scalar_lea.vmem %s1333_s4, %s1339_s15  ;;  %293 = vst [vmem:[%s1214_s27] sm:$0x1] %v1123_v18 }
   0xf   : > { %v1083_v2 = vld [vmem:[%s1176_s24] sm:$0xff]   ;;  %v1084_v3 = vld [vmem:[%s1176_s24 + $0x8] sm:$0xff]   ;;  %v1085_v4 = vld [vmem:[%s1176_s24 + $0x10] sm:$0xff]   ;;  %294 = vst [vmem:[%s1220_s30] sm:$0x1] %v1123_v18  ;;  %s1002_s5 = sshll.u32 %s1339_s15, 8 }
  0x10   : > { %1022 = vmatprep.mubr.msk.bf16.mxu0 %vm412_vm1, %v1083_v2  ;;  %v1086_v5 = vld [vmem:[%s1176_s24 + $0x18] sm:$0xff]   ;;  %v1087_v6 = vld [vmem:[%s1176_s24 + $0x20] sm:$0xff]   ;;  %v1092_v8 = vld [vmem:[%s1176_s24 + $0x48] sm:$0xff]   ;;  %s1228_s8 = scalar_lea.vmem %s1331_s2, %s1002_s5 }
  0x11   : > { %1023 = vmatmul.mubr.msk.bf16.vlgmr.msra.gmra.mxu0 %vm412_vm1, %v1084_v3  ;;  %v1091_v7 = vld [vmem:[%s1176_s24 + $0x40] sm:$0xff]   ;;  %v1093_v9 = vld [vmem:[%s1176_s24 + $0x50] sm:$0xff]   ;;  %v1088_v10 = vld [vmem:[%s1176_s24 + $0x28] sm:$0xff]  }
  0x12   : > { %1026 = vmatprep.mubr.msk.bf16.mxu0 %vm412_vm1, %v1085_v4  ;;  %1038 = vmatprep.mubr.msk.bf16.mxu1 %vm412_vm1, %v1091_v7  ;;  %v1094_v11 = vld [vmem:[%s1176_s24 + $0x58] sm:$0xff]   ;;  %v1089_v12 = vld [vmem:[%s1176_s24 + $0x30] sm:$0xff]   ;;  %v1095_v13 = vld [vmem:[%s1176_s24 + $0x60] sm:$0xff]  }
  0x13   : > { %1039 = vmatmul.mubr.msk.bf16.vlgmr.msra.gmra.mxu1 %vm412_vm1, %v1092_v8  ;;  %v1090_v14 = vld [vmem:[%s1176_s24 + $0x38] sm:$0xff]   ;;  %v1096_v15 = vld [vmem:[%s1176_s24 + $0x68] sm:$0xff]   ;;  %v1097_v16 = vld [vmem:[%s1176_s24 + $0x70] sm:$0xff]  }
  0x14   : > { %1042 = vmatprep.mubr.msk.bf16.mxu1 %vm412_vm1, %v1093_v9  ;;  %v1098_v17 = vld [vmem:[%s1176_s24 + $0x78] sm:$0xff]  }
  0x19   : > { %1027 = vmatmul.mubr.msk.bf16.gmra.mxu0 %vm412_vm1, %v1086_v5 }
  0x1a   : > { %1030 = vmatprep.mubr.msk.bf16.mxu0 %vm412_vm1, %v1087_v6 }
  0x1b   : > { %1043 = vmatmul.mubr.msk.bf16.gmra.mxu1 %vm412_vm1, %v1094_v11 }
  0x1c   : > { %1046 = vmatprep.mubr.msk.bf16.mxu1 %vm412_vm1, %v1095_v13 }
  0x21   : > { %1031 = vmatmul.mubr.msk.bf16.gmra.mxu0 %vm412_vm1, %v1088_v10 }
  0x22   : > { %1034 = vmatprep.mubr.msk.bf16.mxu0 %vm412_vm1, %v1089_v12 }
  0x23   : > { %1047 = vmatmul.mubr.msk.bf16.gmra.mxu1 %vm412_vm1, %v1096_v15 }
  0x24   : > { %1050 = vmatprep.mubr.msk.bf16.mxu1 %vm412_vm1, %v1097_v16 }
  0x29   : > { %1035 = vmatmul.mubr.msk.bf16.gmra.mxu0 %vm412_vm1, %v1090_v14 }
  0x2b   : > { %1051 = vmatmul.mubr.msk.bf16.gmra.mxu1 %vm412_vm1, %v1098_v17 }
  0xd1   : > { %v1024_v19 = vpop.f32.mrf.mxu0 }
  0xd2   : > { %628 = vst [vmem:[%s1228_s8 + $0x10] sm:$0xff] %v1024_v19  ;;  %v701_v28 = vmul.f32 %v1024_v19, %v1024_v19 }
  0xd3   : > { %v499_v20 = vpop.f32.mrf.mxu0  ;;  %v1234_v27 = vpop.f32.mrf.mxu1 }
  0xd4   : > { %626 = vst [vmem:[%s1228_s8] sm:$0xff] %v499_v20  ;;  %v699_v23 = vmul.f32 %v499_v20, %v499_v20  ;;  %644 = vst [vmem:[%s1228_s8 + $0x90] sm:$0xff] %v1234_v27 }
  0xd5   : > { %v1025_v21 = vpop.f32.mrf.mxu0  ;;  %v1239_v32 = vpop.f32.mrf.mxu1 }
  0xd6   : > { %629 = vst [vmem:[%s1228_s8 + $0x18] sm:$0xff] %v1025_v21  ;;  %v702_v33 = vmul.f32 %v1025_v21, %v1025_v21  ;;  %642 = vst [vmem:[%s1228_s8 + $0x80] sm:$0xff] %v1239_v32 }
  0xd7   : > { %v502_v22 = vpop.f32.mrf.mxu0  ;;  %v1244_v37 = vpop.f32.mrf.mxu1 }
  0xd8   : > { %627 = vst [vmem:[%s1228_s8 + $0x8] sm:$0xff] %v502_v22  ;;  %v659_v24 = vadd.f32 %v502_v22, %v499_v20  ;;  %v700_v25 = vmul.f32 %v502_v22, %v502_v22  ;;  %645 = vst [vmem:[%s1228_s8 + $0x98] sm:$0xff] %v1244_v37 }
  0xd9   : > { %v1028_v26 = vpop.f32.mrf.mxu0  ;;  %v1249_v42 = vpop.f32.mrf.mxu1 }
  0xda   : > { %v660_v29 = vadd.f32 %v1024_v19, %v659_v24  ;;  %v731_v30 = vadd.f32 %v700_v25, %v699_v23  ;;  %632 = vst [vmem:[%s1228_s8 + $0x30] sm:$0xff] %v1028_v26  ;;  %643 = vst [vmem:[%s1228_s8 + $0x88] sm:$0xff] %v1249_v42  ;;  %v705_v48 = vmul.f32 %v1028_v26, %v1028_v26 }
  0xdb   : > { %v515_v31 = vpop.f32.mrf.mxu0  ;;  %v1254_v47 = vpop.f32.mrf.mxu1 }
  0xdc   : > { %v732_v34 = vadd.f32 %v731_v30, %v701_v28  ;;  %630 = vst [vmem:[%s1228_s8 + $0x20] sm:$0xff] %v515_v31  ;;  %v661_v35 = vadd.f32 %v1025_v21, %v660_v29  ;;  %v703_v39 = vmul.f32 %v515_v31, %v515_v31  ;;  %648 = vst [vmem:[%s1228_s8 + $0xb0] sm:$0xff] %v1254_v47 }
  0xdd   : > { %v1029_v36 = vpop.f32.mrf.mxu0  ;;  %v1259_v52 = vpop.f32.mrf.mxu1 }
  0xde   : > { %v662_v38 = vadd.f32 %v661_v35, %v515_v31  ;;  %v733_v40 = vadd.f32 %v732_v34, %v702_v33  ;;  %633 = vst [vmem:[%s1228_s8 + $0x38] sm:$0xff] %v1029_v36  ;;  %v706_v53 = vmul.f32 %v1029_v36, %v1029_v36  ;;  %646 = vst [vmem:[%s1228_s8 + $0xa0] sm:$0xff] %v1259_v52 }
  0xdf   : > { %v518_v41 = vpop.f32.mrf.mxu0  ;;  %v1264_v57 = vpop.f32.mrf.mxu1  ;;  %v715_v33 = vmul.f32 %v1239_v32, %v1239_v32 }
  0xe0   : > { %v734_v43 = vadd.f32 %v733_v40, %v703_v39  ;;  %631 = vst [vmem:[%s1228_s8 + $0x28] sm:$0xff] %v518_v41  ;;  %v663_v44 = vadd.f32 %v662_v38, %v518_v41  ;;  %v704_v45 = vmul.f32 %v518_v41, %v518_v41  ;;  %649 = vst [vmem:[%s1228_s8 + $0xb8] sm:$0xff] %v1264_v57 }
  0xe1   : > { %v1032_v46 = vpop.f32.mrf.mxu0  ;;  %v1269_v62 = vpop.f32.mrf.mxu1  ;;  %v716_v39 = vmul.f32 %v1249_v42, %v1249_v42  ;;  %v717_v41 = vmul.f32 %v1234_v27, %v1234_v27 }
  0xe2   : > { %v664_v49 = vadd.f32 %v1028_v26, %v663_v44  ;;  %v735_v50 = vadd.f32 %v734_v43, %v704_v45  ;;  %636 = vst [vmem:[%s1228_s8 + $0x50] sm:$0xff] %v1032_v46  ;;  %647 = vst [vmem:[%s1228_s8 + $0xa8] sm:$0xff] %v1269_v62  ;;  %v709_v4 = vmul.f32 %v1032_v46, %v1032_v46 }
  0xe3   : > { %v531_v51 = vpop.f32.mrf.mxu0  ;;  %v1274_v3 = vpop.f32.mrf.mxu1  ;;  %v718_v45 = vmul.f32 %v1244_v37, %v1244_v37 }
  0xe4   : > { %v736_v54 = vadd.f32 %v735_v50, %v705_v48  ;;  %634 = vst [vmem:[%s1228_s8 + $0x40] sm:$0xff] %v531_v51  ;;  %v665_v55 = vadd.f32 %v1029_v36, %v664_v49  ;;  %v707_v59 = vmul.f32 %v531_v51, %v531_v51  ;;  %652 = vst [vmem:[%s1228_s8 + $0xd0] sm:$0xff] %v1274_v3 }
  0xe5   : > { %v1033_v56 = vpop.f32.mrf.mxu0  ;;  %v595_v8 = vpop.f32.mrf.mxu1  ;;  %v719_v49 = vmul.f32 %v1259_v52, %v1259_v52 }
  0xe6   : > { %v666_v58 = vadd.f32 %v665_v55, %v531_v51  ;;  %v737_v60 = vadd.f32 %v736_v54, %v706_v53  ;;  %637 = vst [vmem:[%s1228_s8 + $0x58] sm:$0xff] %v1033_v56  ;;  %v710_v9 = vmul.f32 %v1033_v56, %v1033_v56  ;;  %650 = vst [vmem:[%s1228_s8 + $0xc0] sm:$0xff] %v595_v8 }
  0xe7   : > { %v534_v61 = vpop.f32.mrf.mxu0  ;;  %v1049_v13 = vpop.f32.mrf.mxu1  ;;  %v720_v53 = vmul.f32 %v1269_v62, %v1269_v62 }
  0xe8   : > { %v738_v63 = vadd.f32 %v737_v60, %v707_v59  ;;  %635 = vst [vmem:[%s1228_s8 + $0x48] sm:$0xff] %v534_v61  ;;  %v667_v0 = vadd.f32 %v666_v58, %v534_v61  ;;  %v708_v1 = vmul.f32 %v534_v61, %v534_v61  ;;  %653 = vst [vmem:[%s1228_s8 + $0xd8] sm:$0xff] %v1049_v13 }
  0xe9   : > { %v1036_v2 = vpop.f32.mrf.mxu0  ;;  %v598_v18 = vpop.f32.mrf.mxu1  ;;  %v723_v59 = vmul.f32 %v595_v8, %v595_v8 }
  0xea   : > { %v668_v5 = vadd.f32 %v1032_v46, %v667_v0  ;;  %v739_v6 = vadd.f32 %v738_v63, %v708_v1  ;;  %640 = vst [vmem:[%s1228_s8 + $0x70] sm:$0xff] %v1036_v2  ;;  %651 = vst [vmem:[%s1228_s8 + $0xc8] sm:$0xff] %v598_v18  ;;  %v713_v23 = vmul.f32 %v1036_v2, %v1036_v2 }
  0xeb   : > { %v547_v7 = vpop.f32.mrf.mxu0  ;;  %v1052_v22 = vpop.f32.mrf.mxu1  ;;  %v724_v0 = vmul.f32 %v598_v18, %v598_v18 }
  0xec   : > { %v740_v10 = vadd.f32 %v739_v6, %v709_v4  ;;  %638 = vst [vmem:[%s1228_s8 + $0x60] sm:$0xff] %v547_v7  ;;  %v669_v11 = vadd.f32 %v1033_v56, %v668_v5  ;;  %v711_v15 = vmul.f32 %v547_v7, %v547_v7  ;;  %656 = vst [vmem:[%s1228_s8 + $0xf0] sm:$0xff] %v1052_v22 }
  0xed   : > { %v1037_v12 = vpop.f32.mrf.mxu0  ;;  %v611_v26 = vpop.f32.mrf.mxu1 }
  0xee   : > { %v670_v14 = vadd.f32 %v669_v11, %v547_v7  ;;  %v741_v16 = vadd.f32 %v740_v10, %v710_v9  ;;  %641 = vst [vmem:[%s1228_s8 + $0x78] sm:$0xff] %v1037_v12  ;;  %v714_v28 = vmul.f32 %v1037_v12, %v1037_v12  ;;  %654 = vst [vmem:[%s1228_s8 + $0xe0] sm:$0xff] %v611_v26 }
  0xef   : > { %v550_v17 = vpop.f32.mrf.mxu0  ;;  %v1053_v31 = vpop.f32.mrf.mxu1  ;;  %v727_v7 = vmul.f32 %v611_v26, %v611_v26 }
  0xf0   : > { %v742_v19 = vadd.f32 %v741_v16, %v711_v15  ;;  %639 = vst [vmem:[%s1228_s8 + $0x68] sm:$0xff] %v550_v17  ;;  %v671_v20 = vadd.f32 %v670_v14, %v550_v17  ;;  %v712_v21 = vmul.f32 %v550_v17, %v550_v17  ;;  %657 = vst [vmem:[%s1228_s8 + $0xf8] sm:$0xff] %v1053_v31 }
  0xf1   : > { %v614_v36 = vpop.f32.mrf.mxu1  ;;  %v730_v15 = vmul.f32 %v1053_v31, %v1053_v31 }
  0xf2   : > { %v672_v24 = vadd.f32 %v1036_v2, %v671_v20  ;;  %v743_v25 = vadd.f32 %v742_v19, %v712_v21  ;;  %655 = vst [vmem:[%s1228_s8 + $0xe8] sm:$0xff] %v614_v36  ;;  %v728_v11 = vmul.f32 %v614_v36, %v614_v36 }
  0xf4   : > { %v673_v29 = vadd.f32 %v1037_v12, %v672_v24  ;;  %v744_v30 = vadd.f32 %v743_v25, %v713_v23 }
  0xf6   : > { %v745_v34 = vadd.f32 %v744_v30, %v714_v28  ;;  %v674_v35 = vadd.f32 %v673_v29, %v1239_v32  ;;  %v658_v28 = vld [vmem:[%s1214_s27] sm:$0x1] }
  0xf7   : > { %v698_v30 = vld [vmem:[%s1220_s30] sm:$0x1] }
  0xf8   : > { %v675_v38 = vadd.f32 %v674_v35, %v1249_v42  ;;  %v746_v40 = vadd.f32 %v745_v34, %v715_v33 }
  0xfa   : > { %v676_v43 = vadd.f32 %v1234_v27, %v675_v38  ;;  %v747_v44 = vadd.f32 %v746_v40, %v716_v39  ;;  %v721_v27 = vmul.f32 %v1254_v47, %v1254_v47 }
  0xfc   : > { %v748_v46 = vadd.f32 %v747_v44, %v717_v41  ;;  %v677_v32 = vadd.f32 %v1244_v37, %v676_v43  ;;  %v722_v37 = vmul.f32 %v1264_v57, %v1264_v57 }
  0xfe   : > { %v678_v48 = vadd.f32 %v677_v32, %v1259_v52  ;;  %v749_v42 = vadd.f32 %v748_v46, %v718_v45 }
 0x100   : > { %v750_v50 = vadd.f32 %v749_v42, %v719_v49  ;;  %v679_v51 = vadd.f32 %v678_v48, %v1269_v62  ;;  %v725_v62 = vmul.f32 %v1274_v3, %v1274_v3 }
 0x102   : > { %v680_v54 = vadd.f32 %v1254_v47, %v679_v51  ;;  %v751_v55 = vadd.f32 %v750_v50, %v720_v53  ;;  %v726_v47 = vmul.f32 %v1049_v13, %v1049_v13 }
 0x104   : > { %v752_v56 = vadd.f32 %v751_v55, %v721_v27  ;;  %v681_v58 = vadd.f32 %v1264_v57, %v680_v54 }
 0x106   : > { %v682_v52 = vadd.f32 %v681_v58, %v595_v8  ;;  %v753_v60 = vadd.f32 %v752_v56, %v722_v37  ;;  %v729_v8 = vmul.f32 %v1052_v22, %v1052_v22 }
 0x108   : > { %v754_v61 = vadd.f32 %v753_v60, %v723_v59  ;;  %v683_v63 = vadd.f32 %v682_v52, %v598_v18 }
 0x10a   : > { %v684_v1 = vadd.f32 %v1274_v3, %v683_v63  ;;  %v755_v2 = vadd.f32 %v754_v61, %v724_v0 }
 0x10c   : > { %v756_v4 = vadd.f32 %v755_v2, %v725_v62  ;;  %v685_v5 = vadd.f32 %v1049_v13, %v684_v1 }
 0x10e   : > { %v686_v6 = vadd.f32 %v685_v5, %v611_v26  ;;  %v757_v9 = vadd.f32 %v756_v4, %v726_v47 }
 0x110   : > { %v758_v10 = vadd.f32 %v757_v9, %v727_v7  ;;  %v687_v57 = vadd.f32 %v686_v6, %v614_v36 }
 0x112   : > { %v688_v12 = vadd.f32 %v1052_v22, %v687_v57  ;;  %v759_v14 = vadd.f32 %v758_v10, %v728_v11 }
 0x114   : > { %v689_v16 = vadd.f32 %v1053_v31, %v688_v12  ;;  %v760_v17 = vadd.f32 %v759_v14, %v729_v8 }
 0x116   : > { %v690_v18 = vrot.slane %v689_v16, 4  ;;  %v761_v3 = vadd.f32 %v760_v17, %v730_v15 }
 0x118   : > { %v691_v19 = vadd.f32 %v690_v18, %v689_v16  ;;  %v762_v13 = vrot.slane %v761_v3, 4 }
 0x11a   : > { %v692_v20 = vrot.slane %v691_v19, 2  ;;  %v763_v21 = vadd.f32 %v762_v13, %v761_v3 }
 0x11c   : > { %v693_v23 = vadd.f32 %v692_v20, %v691_v19  ;;  %v764_v24 = vrot.slane %v763_v21, 2 }
 0x11e   : > { %v694_v25 = vrot.slane %v693_v23, 1  ;;  %v765_v26 = vadd.f32 %v764_v24, %v763_v21 }
 0x120   : > { %v695_v29 = vadd.f32 %v694_v25, %v693_v23  ;;  %v766_v22 = vrot.slane %v765_v26, 1 }
 0x122   : > { %v696_v33 = vadd.f32 %v695_v29, %v658_v28  ;;  %v767_v34 = vadd.f32 %v766_v22, %v765_v26 }
 0x124   : > { %697 = vst [vmem:[%s1214_s27] sm:$0x1] %v696_v33  ;;  %v768_v31 = vadd.f32 %v767_v34, %v698_v30 }
 0x126   : > { %769 = vst [vmem:[%s1220_s30] sm:$0x1] %v768_v31 }
 0x127 PF: > { %s15_s17 = sadd.s32 1, %s1121_s17   ;;  %s1334_s15 = smov %s1117_s16 }
 0x128   : > { %p12_p5 = scmp.ge.s32.totalorder %s15_s17, 4   ;;  %s1335_s16 = smov %s1337_s18 }
 0x12a   :  { %14 = sbr.rel (!%p12_p5) target bundleno = 2 (0x2), region = 90 }

// kernel: aspp_forward.3
= control target key start
LH: loop header
LB: loop body
LE: loop exit
PB: predicated region body
PF: predicated region fallthrough
CT: control target
= control target key end

     0   :  { %s664_s12 = smov 0   ;;  %s666_s13 = smov 0   ;;  %s870_s0 = inlined_call_operand.vmem [shape: f32[2,16,16,128], index: 0, kind: input, shape index: {}, may-alias: {0,3}]   ;;  %s871_s1 = inlined_call_operand.vmem [shape: f32[1,128], index: 1, kind: input, shape index: {}]   ;;  %s872_s2 = inlined_call_operand.vmem [shape: f32[1,128], index: 2, kind: input, shape index: {}]   ;;  %s873_s3 = inlined_call_operand.vmem [shape: f32[2,16,16,128], index: 3, kind: output, shape index: {}, may-alias: {0,3}]  }
   0x1   :  { %s668_s14 = smov 0  }
   0x2 LB: > { %s32_s15 = sadd.s32 1, %s638_s13  ;;  %p585_p0 = scmp.ge.s32.totalorder %s642_s14, 1  ;;  %s642_s14 = sphi %s668_s14, %s13_s14   ;;  %s638_s13 = sphi %s666_s13, %s875_s13   ;;  %s634_s12 = sphi %s664_s12, %s874_s12  }
   0x3   : > { %p34_p1 = scmp.ge.s32.totalorder %s32_s15, 2  ;;  %p189_p2 = scmp.lt.s32.totalorder %s642_s14, 3 }
   0x5   : > { %s877_s15 = smov (%p34_p1, %s32_s15), 0  ;;  %p190_p3 = pnand %p585_p0, %p189_p2 }
   0x6   : > { %p236_p4 = scmp.lt.s32.totalorder (!%p190_p3), %s634_s12, 1 }
   0x7   : > { %193 = sbr.rel (%p190_p3) target bundleno = 45 (0x2d), region = 32 }
   0xc   : > { %s879_s12 = smov (!%p236_p4, %s634_s12), 1  ;;  %v688_v0 = vld [vmem:[%s871_s1] ss:$0 sm:$0xff] }
   0xd   : > { %s594_s16 = sshll.u32 %s879_s12, 8  ;;  %v700_v1 = vld [vmem:[%s872_s2] ss:$0 sm:$0xff] }
   0xe   : > { %s695_s21 = scalar_lea.vmem %s870_s0, %s594_s16  ;;  %s742_s26 = scalar_lea.vmem %s873_s3, %s594_s16 }
   0xf   : > { %v269_v2 = vld [vmem:[%s695_s21] sm:$0xff]  ;;  %v270_v3 = vld [vmem:[%s695_s21 + $0x8] sm:$0xff]  ;;  %v271_v4 = vld [vmem:[%s695_s21 + $0x10] sm:$0xff] }
  0x10   : > { %v272_v5 = vld [vmem:[%s695_s21 + $0x18] sm:$0xff]  ;;  %v273_v6 = vld [vmem:[%s695_s21 + $0x20] sm:$0xff]  ;;  %v274_v7 = vld [vmem:[%s695_s21 + $0x28] sm:$0xff]  ;;  %v308_v8 = vmul.f32 %v688_v0, %v269_v2  ;;  %v309_v9 = vmul.f32 %v688_v0, %v270_v3  ;;  %v310_v10 = vmul.f32 %v688_v0, %v271_v4 }
  0x11   : > { %v275_v11 = vld [vmem:[%s695_s21 + $0x30] sm:$0xff]  ;;  %v276_v12 = vld [vmem:[%s695_s21 + $0x38] sm:$0xff]  ;;  %v311_v13 = vmul.f32 %v688_v0, %v272_v5  ;;  %v312_v14 = vmul.f32 %v688_v0, %v273_v6  ;;  %v313_v15 = vmul.f32 %v688_v0, %v274_v7  ;;  %v277_v20 = vld [vmem:[%s695_s21 + $0x40] sm:$0xff] }
  0x12   : > { %v347_v16 = vadd.f32 %v700_v1, %v308_v8  ;;  %v348_v17 = vadd.f32 %v700_v1, %v309_v9  ;;  %v349_v18 = vadd.f32 %v700_v1, %v310_v10  ;;  %v314_v19 = vmul.f32 %v688_v0, %v275_v11  ;;  %v278_v21 = vld [vmem:[%s695_s21 + $0x48] sm:$0xff]  ;;  %v279_v22 = vld [vmem:[%s695_s21 + $0x50] sm:$0xff]  ;;  %v280_v27 = vld [vmem:[%s695_s21 + $0x58] sm:$0xff] }
  0x13   : > { %v350_v23 = vadd.f32 %v700_v1, %v311_v13  ;;  %v351_v24 = vadd.f32 %v700_v1, %v312_v14  ;;  %v352_v25 = vadd.f32 %v700_v1, %v313_v15  ;;  %v315_v26 = vmul.f32 %v688_v0, %v276_v12  ;;  %v281_v28 = vld [vmem:[%s695_s21 + $0x60] sm:$0xff]  ;;  %v282_v29 = vld [vmem:[%s695_s21 + $0x68] sm:$0xff]  ;;  %v283_v34 = vld [vmem:[%s695_s21 + $0x70] sm:$0xff] }
  0x14   : > { %v379_v30 = vmax.f32 %v347_v16, 0.0  ;;  %v380_v31 = vmax.f32 %v348_v17, 0.0  ;;  %v381_v32 = vmax.f32 %v349_v18, 0.0  ;;  %v353_v33 = vadd.f32 %v700_v1, %v314_v19  ;;  %v284_v39 = vld [vmem:[%s695_s21 + $0x78] sm:$0xff]  ;;  %v285_v44 = vld [vmem:[%s695_s21 + $0x80] sm:$0xff]  ;;  %v286_v45 = vld [vmem:[%s695_s21 + $0x88] sm:$0xff] }
  0x15   : > { %v382_v35 = vmax.f32 %v350_v23, 0.0  ;;  %v383_v36 = vmax.f32 %v351_v24, 0.0  ;;  %v384_v37 = vmax.f32 %v352_v25, 0.0  ;;  %v354_v38 = vadd.f32 %v700_v1, %v315_v26  ;;  %v287_v46 = vld [vmem:[%s695_s21 + $0x90] sm:$0xff]  ;;  %v288_v47 = vld [vmem:[%s695_s21 + $0x98] sm:$0xff]  ;;  %v289_v48 = vld [vmem:[%s695_s21 + $0xa0] sm:$0xff] }
  0x16   : > { %v385_v40 = vmax.f32 %v353_v33, 0.0  ;;  %v316_v41 = vmul.f32 %v688_v0, %v277_v20  ;;  %v317_v42 = vmul.f32 %v688_v0, %v278_v21  ;;  %v318_v43 = vmul.f32 %v688_v0, %v279_v22  ;;  %v290_v49 = vld [vmem:[%s695_s21 + $0xa8] sm:$0xff]  ;;  %v291_v50 = vld [vmem:[%s695_s21 + $0xb0] sm:$0xff]  ;;  %v292_v51 = vld [vmem:[%s695_s21 + $0xb8] sm:$0xff] }
  0x17   : > { %v753_v52 = vld [vmem:[%s695_s21 + $0xc0] sm:$0xff]  ;;  %v756_v53 = vld [vmem:[%s695_s21 + $0xc8] sm:$0xff]  ;;  %v386_v54 = vmax.f32 %v354_v38, 0.0  ;;  %v319_v55 = vmul.f32 %v688_v0, %v280_v27  ;;  %v320_v56 = vmul.f32 %v688_v0, %v281_v28  ;;  %v321_v57 = vmul.f32 %v688_v0, %v282_v29  ;;  %v762_v58 = vld [vmem:[%s695_s21 + $0xd0] sm:$0xff] }
  0x18   : > { %v765_v59 = vld [vmem:[%s695_s21 + $0xd8] sm:$0xff]  ;;  %v768_v60 = vld [vmem:[%s695_s21 + $0xe0] sm:$0xff]  ;;  %v355_v61 = vadd.f32 %v700_v1, %v316_v41  ;;  %v356_v62 = vadd.f32 %v700_v1, %v317_v42  ;;  %v357_v63 = vadd.f32 %v700_v1, %v318_v43  ;;  %v322_v2 = vmul.f32 %v688_v0, %v283_v34  ;;  %v775_v3 = vld [vmem:[%s695_s21 + $0xe8] sm:$0xff] }
  0x19   : > { %v778_v4 = vld [vmem:[%s695_s21 + $0xf0] sm:$0xff]  ;;  %v781_v5 = vld [vmem:[%s695_s21 + $0xf8] sm:$0xff]  ;;  %v358_v6 = vadd.f32 %v700_v1, %v319_v55  ;;  %v359_v7 = vadd.f32 %v700_v1, %v320_v56  ;;  %v360_v8 = vadd.f32 %v700_v1, %v321_v57  ;;  %v323_v9 = vmul.f32 %v688_v0, %v284_v39 }
  0x1a   : > { %411 = vst [vmem:[%s742_s26] sm:$0xff] %v379_v30  ;;  %412 = vst [vmem:[%s742_s26 + $0x8] sm:$0xff] %v380_v31  ;;  %v387_v10 = vmax.f32 %v355_v61, 0.0  ;;  %v388_v11 = vmax.f32 %v356_v62, 0.0  ;;  %v389_v12 = vmax.f32 %v357_v63, 0.0  ;;  %v361_v13 = vadd.f32 %v700_v1, %v322_v2 }
  0x1b   : > { %413 = vst [vmem:[%s742_s26 + $0x10] sm:$0xff] %v381_v32  ;;  %414 = vst [vmem:[%s742_s26 + $0x18] sm:$0xff] %v382_v35  ;;  %v390_v14 = vmax.f32 %v358_v6, 0.0  ;;  %v391_v15 = vmax.f32 %v359_v7, 0.0  ;;  %v392_v16 = vmax.f32 %v360_v8, 0.0  ;;  %v362_v17 = vadd.f32 %v700_v1, %v323_v9 }
  0x1c   : > { %415 = vst [vmem:[%s742_s26 + $0x20] sm:$0xff] %v383_v36  ;;  %416 = vst [vmem:[%s742_s26 + $0x28] sm:$0xff] %v384_v37  ;;  %v393_v18 = vmax.f32 %v361_v13, 0.0  ;;  %v324_v19 = vmul.f32 %v688_v0, %v285_v44  ;;  %v325_v20 = vmul.f32 %v688_v0, %v286_v45  ;;  %v326_v21 = vmul.f32 %v688_v0, %v287_v46 }
  0x1d   : > { %417 = vst [vmem:[%s742_s26 + $0x30] sm:$0xff] %v385_v40  ;;  %418 = vst [vmem:[%s742_s26 + $0x38] sm:$0xff] %v386_v54  ;;  %v394_v22 = vmax.f32 %v362_v17, 0.0  ;;  %v327_v23 = vmul.f32 %v688_v0, %v288_v47  ;;  %v328_v24 = vmul.f32 %v688_v0, %v289_v48  ;;  %v329_v25 = vmul.f32 %v688_v0, %v290_v49 }
  0x1e   : > { %419 = vst [vmem:[%s742_s26 + $0x40] sm:$0xff] %v387_v10  ;;  %420 = vst [vmem:[%s742_s26 + $0x48] sm:$0xff] %v388_v11  ;;  %v363_v26 = vadd.f32 %v700_v1, %v324_v19  ;;  %v364_v27 = vadd.f32 %v700_v1, %v325_v20  ;;  %v365_v28 = vadd.f32 %v700_v1, %v326_v21 }
  0x1f   : > { %421 = vst [vmem:[%s742_s26 + $0x50] sm:$0xff] %v389_v12  ;;  %422 = vst [vmem:[%s742_s26 + $0x58] sm:$0xff] %v390_v14  ;;  %v330_v29 = vmul.f32 %v688_v0, %v291_v50  ;;  %v366_v30 = vadd.f32 %v700_v1, %v327_v23  ;;  %v367_v31 = vadd.f32 %v700_v1, %v328_v24 }
  0x20   : > { %423 = vst [vmem:[%s742_s26 + $0x60] sm:$0xff] %v391_v15  ;;  %424 = vst [vmem:[%s742_s26 + $0x68] sm:$0xff] %v392_v16  ;;  %v368_v32 = vadd.f32 %v700_v1, %v329_v25  ;;  %v331_v33 = vmul.f32 %v688_v0, %v292_v51  ;;  %v395_v34 = vmax.f32 %v363_v26, 0.0  ;;  %v396_v35 = vmax.f32 %v364_v27, 0.0 }
  0x21   : > { %425 = vst [vmem:[%s742_s26 + $0x70] sm:$0xff] %v393_v18  ;;  %426 = vst [vmem:[%s742_s26 + $0x78] sm:$0xff] %v394_v22  ;;  %v397_v36 = vmax.f32 %v365_v28, 0.0  ;;  %v369_v37 = vadd.f32 %v700_v1, %v330_v29  ;;  %v398_v38 = vmax.f32 %v366_v30, 0.0  ;;  %v399_v39 = vmax.f32 %v367_v31, 0.0 }
  0x22   : > { %v400_v40 = vmax.f32 %v368_v32, 0.0  ;;  %v370_v41 = vadd.f32 %v700_v1, %v331_v33  ;;  %427 = vst [vmem:[%s742_s26 + $0x80] sm:$0xff] %v395_v34  ;;  %428 = vst [vmem:[%s742_s26 + $0x88] sm:$0xff] %v396_v35  ;;  %v332_v43 = vmul.f32 %v688_v0, %v753_v52  ;;  %v333_v44 = vmul.f32 %v688_v0, %v756_v53 }
  0x23   : > { %429 = vst [vmem:[%s742_s26 + $0x90] sm:$0xff] %v397_v36  ;;  %v401_v42 = vmax.f32 %v369_v37, 0.0  ;;  %v334_v45 = vmul.f32 %v688_v0, %v762_v58  ;;  %430 = vst [vmem:[%s742_s26 + $0x98] sm:$0xff] %v398_v38  ;;  %v335_v47 = vmul.f32 %v688_v0, %v765_v59  ;;  %v336_v48 = vmul.f32 %v688_v0, %v768_v60 }
  0x24   : > { %431 = vst [vmem:[%s742_s26 + $0xa0] sm:$0xff] %v399_v39  ;;  %432 = vst [vmem:[%s742_s26 + $0xa8] sm:$0xff] %v400_v40  ;;  %v402_v46 = vmax.f32 %v370_v41, 0.0  ;;  %v337_v49 = vmul.f32 %v688_v0, %v775_v3  ;;  %v371_v50 = vadd.f32 %v700_v1, %v332_v43  ;;  %v372_v51 = vadd.f32 %v700_v1, %v333_v44 }
  0x25   : > { %433 = vst [vmem:[%s742_s26 + $0xb0] sm:$0xff] %v401_v42  ;;  %v373_v52 = vadd.f32 %v700_v1, %v334_v45  ;;  %v338_v53 = vmul.f32 %v688_v0, %v778_v4  ;;  %v374_v54 = vadd.f32 %v700_v1, %v335_v47  ;;  %v375_v55 = vadd.f32 %v700_v1, %v336_v48 }
  0x26   : > { %434 = vst [vmem:[%s742_s26 + $0xb8] sm:$0xff] %v402_v46  ;;  %v376_v56 = vadd.f32 %v700_v1, %v337_v49  ;;  %v339_v57 = vmul.f32 %v688_v0, %v781_v5  ;;  %v403_v58 = vmax.f32 %v371_v50, 0.0  ;;  %v404_v59 = vmax.f32 %v372_v51, 0.0 }
  0x27   : > { %v405_v60 = vmax.f32 %v373_v52, 0.0  ;;  %v377_v61 = vadd.f32 %v700_v1, %v338_v53  ;;  %v406_v62 = vmax.f32 %v374_v54, 0.0  ;;  %v407_v63 = vmax.f32 %v375_v55, 0.0 }
  0x28   : > { %v408_v2 = vmax.f32 %v376_v56, 0.0  ;;  %v378_v3 = vadd.f32 %v700_v1, %v339_v57  ;;  %435 = vst [vmem:[%s742_s26 + $0xc0] sm:$0xff] %v403_v58  ;;  %436 = vst [vmem:[%s742_s26 + $0xc8] sm:$0xff] %v404_v59 }
  0x29   : > { %437 = vst [vmem:[%s742_s26 + $0xd0] sm:$0xff] %v405_v60  ;;  %v409_v4 = vmax.f32 %v377_v61, 0.0  ;;  %438 = vst [vmem:[%s742_s26 + $0xd8] sm:$0xff] %v406_v62 }
  0x2a   : > { %439 = vst [vmem:[%s742_s26 + $0xe0] sm:$0xff] %v407_v63  ;;  %440 = vst [vmem:[%s742_s26 + $0xe8] sm:$0xff] %v408_v2  ;;  %v410_v0 = vmax.f32 %v378_v3, 0.0 }
  0x2b   : > { %441 = vst [vmem:[%s742_s26 + $0xf0] sm:$0xff] %v409_v4 }
  0x2c   : > { %442 = vst [vmem:[%s742_s26 + $0xf8] sm:$0xff] %v410_v0 }
  0x2d PF: > { %s13_s14 = sadd.s32 1, %s642_s14   ;;  %s874_s12 = smov %s638_s13 }
  0x2e   : > { %p10_p5 = scmp.ge.s32.totalorder %s13_s14, 4   ;;  %s875_s13 = smov %s877_s15 }
  0x30   :  { %12 = sbr.rel (!%p10_p5) target bundleno = 2 (0x2), region = 68 }

</bundles_post_ra>
